<compile_context>
chip_gen: v6e
topology: v6e:2x2x1
jax: 0.10.0
libtpu: 0.0.40
codegen_flags: <defaults>
</compile_context>

<pallas_src>
import jax
import jax.numpy as jnp
import numpy as np
from jax.experimental import pallas as pl
from jax.experimental.pallas import tpu as pltpu


# ----------------------------- Pallas kernel ------------------------------ #

def _make_mhsa_kernel(batch_block, seq_len, embed_dim, num_heads):
    head_dim = embed_dim // num_heads
    rows = batch_block * seq_len

    def kernel(x_ref, wqkv_ref, bqkv_ref, wout_ref, bout_ref, out_ref):
        # Flatten the batch block onto sublanes: projections become single
        # large MXU matmuls instead of per-element ones.
        x = x_ref[...].reshape(rows, embed_dim).astype(jnp.float32)

        # Fused QKV projection (scale already folded into the Q columns).
        qkv = jnp.dot(x, wqkv_ref[...],
                      preferred_element_type=jnp.float32) + bqkv_ref[...]

        attn_rows = []
        for b in range(batch_block):
            r0 = b * seq_len
            head_outs = []
            for h in range(num_heads):
                c0 = h * head_dim
                q_h = qkv[r0:r0 + seq_len, c0:c0 + head_dim]
                k_h = qkv[r0:r0 + seq_len,
                          embed_dim + c0:embed_dim + c0 + head_dim]
                v_h = qkv[r0:r0 + seq_len,
                          2 * embed_dim + c0:2 * embed_dim + c0 + head_dim]

                # scores[t, s] = sum_d q[t, d] * k[s, d]  (no explicit transpose)
                scores = jax.lax.dot_general(
                    q_h, k_h, (((1,), (1,)), ((), ())),
                    preferred_element_type=jnp.float32)        # (S, S)

                # Numerically stable softmax along the key axis.
                scores = scores - jnp.max(scores, axis=-1, keepdims=True)
                e = jnp.exp(scores)
                p = e / jnp.sum(e, axis=-1, keepdims=True)
                # attn_dropout: identity in eval mode.

                head_outs.append(
                    jnp.dot(p, v_h, preferred_element_type=jnp.float32))
            # Heads back onto lanes == transpose(1,2).reshape(S, E) in torch.
            attn_rows.append(jnp.concatenate(head_outs, axis=-1))  # (S, E)

        attn = attn_rows[0] if batch_block == 1 else jnp.concatenate(attn_rows,
                                                                     axis=0)
        out = jnp.dot(attn, wout_ref[...],
                      preferred_element_type=jnp.float32) + bout_ref[...]
        out_ref[...] = out.reshape(batch_block, seq_len,
                                   embed_dim).astype(out_ref.dtype)

    return kernel


def multi_head_self_attention(x, folded, *, num_heads, batch_block=1):
    B, S, E = x.shape
    assert B % batch_block == 0
    wqkv, bqkv = folded["wqkv"], folded["bqkv"]
    wout, bout = folded["wout"], folded["bout"]

    kernel = _make_mhsa_kernel(batch_block, S, E, num_heads)

    out = pl.pallas_call(
        kernel,
        out_shape=jax.ShapeDtypeStruct((B, S, E), jnp.float32),
        grid_spec=pltpu.PrefetchScalarGridSpec(
            num_scalar_prefetch=0,
            grid=(B // batch_block,),
            in_specs=[
                pl.BlockSpec((batch_block, S, E), lambda b: (b, 0, 0)),
                pl.BlockSpec(wqkv.shape, lambda b: (0, 0)),
                pl.BlockSpec(bqkv.shape, lambda b: (0, 0)),
                pl.BlockSpec(wout.shape, lambda b: (0, 0)),
                pl.BlockSpec(bout.shape, lambda b: (0, 0)),
            ],
            out_specs=pl.BlockSpec((batch_block, S, E), lambda b: (b, 0, 0)),
        ),
        compiler_params=pltpu.CompilerParams(
            dimension_semantics=("parallel",)),
    )(x, wqkv, bqkv, wout, bout)
    return out


# ------------------------ parameters & host-side folding ------------------- #

def init_params(key, embed_dim):
    kw1, kb1, kw2, kb2 = jax.random.split(key, 4)
    return dict(
        # Stored input-major: qkv = x @ wqkv + bqkv (== torch x @ W.T + b).
        wqkv=0.1 * jax.random.normal(kw1, (embed_dim, 3 * embed_dim), jnp.float32),
        bqkv=0.1 * jax.random.normal(kb1, (3 * embed_dim,), jnp.float32),
        wout=0.1 * jax.random.normal(kw2, (embed_dim, embed_dim), jnp.float32),
        bout=0.1 * jax.random.normal(kb2, (embed_dim,), jnp.float32),
    )


def fold_params(raw, *, num_heads):
    """Fold the 1/sqrt(head_dim) attention scale into the Q weight/bias."""
    E = raw["wout"].shape[0]
    head_dim = E // num_heads
    scale = 1.0 / np.sqrt(head_dim)
    col = jnp.arange(3 * E)
    colscale = jnp.where(col < E, scale, 1.0).astype(jnp.float32)
    return dict(
        wqkv=raw["wqkv"] * colscale[None, :],
        bqkv=(raw["bqkv"] * colscale).reshape(1, -1),
        wout=raw["wout"],
        bout=raw["bout"].reshape(1, -1),
    )


# ----------------------- pure-JAX reference (torch math) ------------------- #

def ref_forward(x, raw, *, num_heads):
    B, S, E = x.shape
    hd = E // num_heads
    hi = jax.lax.Precision.HIGHEST

    qkv = jnp.einsum("bse,ef->bsf", x, raw["wqkv"], precision=hi) + raw["bqkv"]
    q, k, v = jnp.split(qkv, 3, axis=-1)

    def to_heads(t):
        return jnp.transpose(t.reshape(B, S, num_heads, hd), (0, 2, 1, 3))

    q, k, v = to_heads(q), to_heads(k), to_heads(v)
    scores = jnp.einsum("bhqd,bhkd->bhqk", q, k, precision=hi) / np.sqrt(hd)
    w = jax.nn.softmax(scores, axis=-1)          # dropout: identity in eval mode
    attn = jnp.einsum("bhqk,bhkd->bhqd", w, v, precision=hi)
    attn = jnp.transpose(attn, (0, 2, 1, 3)).reshape(B, S, E)
    return jnp.einsum("bse,ef->bsf", attn, raw["wout"], precision=hi) + raw["bout"]


# --------------------------------- main ------------------------------------ #

if __name__ == "__main__":
    B, S, E, H = 2, 16, 32, 4

    key = jax.random.PRNGKey(0)
    kx, kp = jax.random.split(key)
    x = jax.random.normal(kx, (B, S, E), jnp.float32)

    raw = init_params(kp, E)
    folded = fold_params(raw, num_heads=H)

    out = multi_head_self_attention(x, folded, num_heads=H, batch_block=1)
    out = jax.block_until_ready(out)

    ref = jax.block_until_ready(ref_forward(x, raw, num_heads=H))
    assert out.shape == (B, S, E)
    np.testing.assert_allclose(np.asarray(out), np.asarray(ref),
                               rtol=2e-3, atol=2e-3)
    print("KERNEL_OK")
</pallas_src>

<mosaic_0001>
module attributes {stable_mosaic.version = 11 : i64} {
  func.func @kernel(%arg0: i32, %arg1: memref<1x16x32xf32, #tpu.memory_space<vmem>>, %arg2: memref<32x96xf32, #tpu.memory_space<vmem>>, %arg3: memref<1x96xf32, #tpu.memory_space<vmem>>, %arg4: memref<32x32xf32, #tpu.memory_space<vmem>>, %arg5: memref<1x32xf32, #tpu.memory_space<vmem>>, %arg6: memref<1x16x32xf32, #tpu.memory_space<vmem>>) attributes {dimension_semantics = [#tpu.dimension_semantics<parallel>], iteration_bounds = array<i64: 2>, scalar_prefetch = 0 : i64, scratch_operands = 0 : i64, tpu.core_type = #tpu.core_type<tc>, window_params = [{transform_indices = @transform_0, window_bounds = array<i64: 1, 16, 32>}, {pipeline_mode = #tpu.pipeline_mode<synchronous>, transform_indices = @transform_1, window_bounds = array<i64: 32, 96>}, {pipeline_mode = #tpu.pipeline_mode<synchronous>, transform_indices = @transform_2, window_bounds = array<i64: 1, 96>}, {pipeline_mode = #tpu.pipeline_mode<synchronous>, transform_indices = @transform_3, window_bounds = array<i64: 32, 32>}, {pipeline_mode = #tpu.pipeline_mode<synchronous>, transform_indices = @transform_4, window_bounds = array<i64: 1, 32>}, {transform_indices = @transform_5, window_bounds = array<i64: 1, 16, 32>}]} {
    %c0 = arith.constant 0 : index
    %c0_0 = arith.constant 0 : index
    %c0_1 = arith.constant 0 : index
    %0 = vector.load %arg1[%c0, %c0_0, %c0_1] : memref<1x16x32xf32, #tpu.memory_space<vmem>>, vector<1x16x32xf32>
    %1 = vector.shape_cast %0 : vector<1x16x32xf32> to vector<16x32xf32>
    %c0_2 = arith.constant 0 : index
    %c0_3 = arith.constant 0 : index
    %2 = vector.load %arg2[%c0_2, %c0_3] : memref<32x96xf32, #tpu.memory_space<vmem>>, vector<32x96xf32>
    %cst = arith.constant dense<0.000000e+00> : vector<16x96xf32>
    %3 = tpu.matmul %1, %2, %cst {dimension_numbers = #tpu.dot_dimension_numbers<[1], [0], [0], [1], [0, 0, 1, 1], [], []>} : vector<16x32xf32>, vector<32x96xf32>, vector<16x96xf32> -> vector<16x96xf32>
    %c0_4 = arith.constant 0 : index
    %c0_5 = arith.constant 0 : index
    %4 = vector.load %arg3[%c0_4, %c0_5] : memref<1x96xf32, #tpu.memory_space<vmem>>, vector<1x96xf32>
    %5 = vector.broadcast %4 : vector<1x96xf32> to vector<16x96xf32>
    %6 = arith.addf %3, %5 : vector<16x96xf32>
    %7 = vector.extract_strided_slice %6 {offsets = [0, 0], sizes = [16, 8], strides = [1, 1]} : vector<16x96xf32> to vector<16x8xf32>
    %8 = vector.extract_strided_slice %6 {offsets = [0, 32], sizes = [16, 8], strides = [1, 1]} : vector<16x96xf32> to vector<16x8xf32>
    %9 = vector.extract_strided_slice %6 {offsets = [0, 64], sizes = [16, 8], strides = [1, 1]} : vector<16x96xf32> to vector<16x8xf32>
    %cst_6 = arith.constant dense<0.000000e+00> : vector<16x16xf32>
    %10 = tpu.matmul %7, %8, %cst_6 {dimension_numbers = #tpu.dot_dimension_numbers<[1], [1], [0], [0], [0, 0, 1, 0], [], []>} : vector<16x8xf32>, vector<16x8xf32>, vector<16x16xf32> -> vector<16x16xf32>
    %cst_7 = arith.constant dense<0xFF800000> : vector<16xf32>
    %11 = vector.multi_reduction <maximumf>, %10, %cst_7 [1] : vector<16x16xf32> to vector<16xf32>
    %12 = vector.shape_cast %11 : vector<16xf32> to vector<16x1xf32>
    %13 = vector.broadcast %12 : vector<16x1xf32> to vector<16x16xf32>
    %14 = arith.subf %10, %13 : vector<16x16xf32>
    %15 = math.exp %14 : vector<16x16xf32>
    %cst_8 = arith.constant dense<0.000000e+00> : vector<16xf32>
    %16 = vector.multi_reduction <add>, %15, %cst_8 [1] : vector<16x16xf32> to vector<16xf32>
    %17 = vector.shape_cast %16 : vector<16xf32> to vector<16x1xf32>
    %18 = vector.broadcast %17 : vector<16x1xf32> to vector<16x16xf32>
    %19 = arith.divf %15, %18 : vector<16x16xf32>
    %cst_9 = arith.constant dense<0.000000e+00> : vector<16x8xf32>
    %20 = tpu.matmul %19, %9, %cst_9 {dimension_numbers = #tpu.dot_dimension_numbers<[1], [0], [0], [1], [0, 0, 1, 1], [], []>} : vector<16x16xf32>, vector<16x8xf32>, vector<16x8xf32> -> vector<16x8xf32>
    %21 = vector.extract_strided_slice %6 {offsets = [0, 8], sizes = [16, 8], strides = [1, 1]} : vector<16x96xf32> to vector<16x8xf32>
    %22 = vector.extract_strided_slice %6 {offsets = [0, 40], sizes = [16, 8], strides = [1, 1]} : vector<16x96xf32> to vector<16x8xf32>
    %23 = vector.extract_strided_slice %6 {offsets = [0, 72], sizes = [16, 8], strides = [1, 1]} : vector<16x96xf32> to vector<16x8xf32>
    %cst_10 = arith.constant dense<0.000000e+00> : vector<16x16xf32>
    %24 = tpu.matmul %21, %22, %cst_10 {dimension_numbers = #tpu.dot_dimension_numbers<[1], [1], [0], [0], [0, 0, 1, 0], [], []>} : vector<16x8xf32>, vector<16x8xf32>, vector<16x16xf32> -> vector<16x16xf32>
    %cst_11 = arith.constant dense<0xFF800000> : vector<16xf32>
    %25 = vector.multi_reduction <maximumf>, %24, %cst_11 [1] : vector<16x16xf32> to vector<16xf32>
    %26 = vector.shape_cast %25 : vector<16xf32> to vector<16x1xf32>
    %27 = vector.broadcast %26 : vector<16x1xf32> to vector<16x16xf32>
    %28 = arith.subf %24, %27 : vector<16x16xf32>
    %29 = math.exp %28 : vector<16x16xf32>
    %cst_12 = arith.constant dense<0.000000e+00> : vector<16xf32>
    %30 = vector.multi_reduction <add>, %29, %cst_12 [1] : vector<16x16xf32> to vector<16xf32>
    %31 = vector.shape_cast %30 : vector<16xf32> to vector<16x1xf32>
    %32 = vector.broadcast %31 : vector<16x1xf32> to vector<16x16xf32>
    %33 = arith.divf %29, %32 : vector<16x16xf32>
    %cst_13 = arith.constant dense<0.000000e+00> : vector<16x8xf32>
    %34 = tpu.matmul %33, %23, %cst_13 {dimension_numbers = #tpu.dot_dimension_numbers<[1], [0], [0], [1], [0, 0, 1, 1], [], []>} : vector<16x16xf32>, vector<16x8xf32>, vector<16x8xf32> -> vector<16x8xf32>
    %35 = vector.extract_strided_slice %6 {offsets = [0, 16], sizes = [16, 8], strides = [1, 1]} : vector<16x96xf32> to vector<16x8xf32>
    %36 = vector.extract_strided_slice %6 {offsets = [0, 48], sizes = [16, 8], strides = [1, 1]} : vector<16x96xf32> to vector<16x8xf32>
    %37 = vector.extract_strided_slice %6 {offsets = [0, 80], sizes = [16, 8], strides = [1, 1]} : vector<16x96xf32> to vector<16x8xf32>
    %cst_14 = arith.constant dense<0.000000e+00> : vector<16x16xf32>
    %38 = tpu.matmul %35, %36, %cst_14 {dimension_numbers = #tpu.dot_dimension_numbers<[1], [1], [0], [0], [0, 0, 1, 0], [], []>} : vector<16x8xf32>, vector<16x8xf32>, vector<16x16xf32> -> vector<16x16xf32>
    %cst_15 = arith.constant dense<0xFF800000> : vector<16xf32>
    %39 = vector.multi_reduction <maximumf>, %38, %cst_15 [1] : vector<16x16xf32> to vector<16xf32>
    %40 = vector.shape_cast %39 : vector<16xf32> to vector<16x1xf32>
    %41 = vector.broadcast %40 : vector<16x1xf32> to vector<16x16xf32>
    %42 = arith.subf %38, %41 : vector<16x16xf32>
    %43 = math.exp %42 : vector<16x16xf32>
    %cst_16 = arith.constant dense<0.000000e+00> : vector<16xf32>
    %44 = vector.multi_reduction <add>, %43, %cst_16 [1] : vector<16x16xf32> to vector<16xf32>
    %45 = vector.shape_cast %44 : vector<16xf32> to vector<16x1xf32>
    %46 = vector.broadcast %45 : vector<16x1xf32> to vector<16x16xf32>
    %47 = arith.divf %43, %46 : vector<16x16xf32>
    %cst_17 = arith.constant dense<0.000000e+00> : vector<16x8xf32>
    %48 = tpu.matmul %47, %37, %cst_17 {dimension_numbers = #tpu.dot_dimension_numbers<[1], [0], [0], [1], [0, 0, 1, 1], [], []>} : vector<16x16xf32>, vector<16x8xf32>, vector<16x8xf32> -> vector<16x8xf32>
    %49 = vector.extract_strided_slice %6 {offsets = [0, 24], sizes = [16, 8], strides = [1, 1]} : vector<16x96xf32> to vector<16x8xf32>
    %50 = vector.extract_strided_slice %6 {offsets = [0, 56], sizes = [16, 8], strides = [1, 1]} : vector<16x96xf32> to vector<16x8xf32>
    %51 = vector.extract_strided_slice %6 {offsets = [0, 88], sizes = [16, 8], strides = [1, 1]} : vector<16x96xf32> to vector<16x8xf32>
    %cst_18 = arith.constant dense<0.000000e+00> : vector<16x16xf32>
    %52 = tpu.matmul %49, %50, %cst_18 {dimension_numbers = #tpu.dot_dimension_numbers<[1], [1], [0], [0], [0, 0, 1, 0], [], []>} : vector<16x8xf32>, vector<16x8xf32>, vector<16x16xf32> -> vector<16x16xf32>
    %cst_19 = arith.constant dense<0xFF800000> : vector<16xf32>
    %53 = vector.multi_reduction <maximumf>, %52, %cst_19 [1] : vector<16x16xf32> to vector<16xf32>
    %54 = vector.shape_cast %53 : vector<16xf32> to vector<16x1xf32>
    %55 = vector.broadcast %54 : vector<16x1xf32> to vector<16x16xf32>
    %56 = arith.subf %52, %55 : vector<16x16xf32>
    %57 = math.exp %56 : vector<16x16xf32>
    %cst_20 = arith.constant dense<0.000000e+00> : vector<16xf32>
    %58 = vector.multi_reduction <add>, %57, %cst_20 [1] : vector<16x16xf32> to vector<16xf32>
    %59 = vector.shape_cast %58 : vector<16xf32> to vector<16x1xf32>
    %60 = vector.broadcast %59 : vector<16x1xf32> to vector<16x16xf32>
    %61 = arith.divf %57, %60 : vector<16x16xf32>
    %cst_21 = arith.constant dense<0.000000e+00> : vector<16x8xf32>
    %62 = tpu.matmul %61, %51, %cst_21 {dimension_numbers = #tpu.dot_dimension_numbers<[1], [0], [0], [1], [0, 0, 1, 1], [], []>} : vector<16x16xf32>, vector<16x8xf32>, vector<16x8xf32> -> vector<16x8xf32>
    %63 = tpu.concatenate %20, %34, %48, %62 in 1 : vector<16x8xf32>, vector<16x8xf32>, vector<16x8xf32>, vector<16x8xf32> -> vector<16x32xf32>
    %c0_22 = arith.constant 0 : index
    %c0_23 = arith.constant 0 : index
    %64 = vector.load %arg4[%c0_22, %c0_23] : memref<32x32xf32, #tpu.memory_space<vmem>>, vector<32x32xf32>
    %cst_24 = arith.constant dense<0.000000e+00> : vector<16x32xf32>
    %65 = tpu.matmul %63, %64, %cst_24 {dimension_numbers = #tpu.dot_dimension_numbers<[1], [0], [0], [1], [0, 0, 1, 1], [], []>} : vector<16x32xf32>, vector<32x32xf32>, vector<16x32xf32> -> vector<16x32xf32>
    %c0_25 = arith.constant 0 : index
    %c0_26 = arith.constant 0 : index
    %66 = vector.load %arg5[%c0_25, %c0_26] : memref<1x32xf32, #tpu.memory_space<vmem>>, vector<1x32xf32>
    %67 = vector.broadcast %66 : vector<1x32xf32> to vector<16x32xf32>
    %68 = arith.addf %65, %67 : vector<16x32xf32>
    %69 = vector.shape_cast %68 : vector<16x32xf32> to vector<1x16x32xf32>
    %c0_27 = arith.constant 0 : index
    %c0_28 = arith.constant 0 : index
    %c0_29 = arith.constant 0 : index
    %70 = vector.load %arg6[%c0_27, %c0_28, %c0_29] : memref<1x16x32xf32, #tpu.memory_space<vmem>>, vector<1x16x32xf32>
    tpu.vector_store %arg6[%c0_27, %c0_28, %c0_29], %69 {strides = array<i32>} : memref<1x16x32xf32, #tpu.memory_space<vmem>>, vector<1x16x32xf32>,
    return
  }
  func.func @transform_0(%arg0: i32) -> (i32, i32, i32) {
    %c0_i32 = arith.constant 0 : i32
    %c0_i32_0 = arith.constant 0 : i32
    %c0_i32_1 = arith.constant 0 : i32
    return %arg0, %c0_i32, %c0_i32_0 : i32, i32, i32
  }
  func.func @transform_1(%arg0: i32) -> (i32, i32) {
    %c0_i32 = arith.constant 0 : i32
    %c0_i32_0 = arith.constant 0 : i32
    %c0_i32_1 = arith.constant 0 : i32
    return %c0_i32, %c0_i32_0 : i32, i32
  }
  func.func @transform_2(%arg0: i32) -> (i32, i32) {
    %c0_i32 = arith.constant 0 : i32
    %c0_i32_0 = arith.constant 0 : i32
    %c0_i32_1 = arith.constant 0 : i32
    return %c0_i32, %c0_i32_0 : i32, i32
  }
  func.func @transform_3(%arg0: i32) -> (i32, i32) {
    %c0_i32 = arith.constant 0 : i32
    %c0_i32_0 = arith.constant 0 : i32
    %c0_i32_1 = arith.constant 0 : i32
    return %c0_i32, %c0_i32_0 : i32, i32
  }
  func.func @transform_4(%arg0: i32) -> (i32, i32) {
    %c0_i32 = arith.constant 0 : i32
    %c0_i32_0 = arith.constant 0 : i32
    %c0_i32_1 = arith.constant 0 : i32
    return %c0_i32, %c0_i32_0 : i32, i32
  }
  func.func @transform_5(%arg0: i32) -> (i32, i32, i32) {
    %c0_i32 = arith.constant 0 : i32
    %c0_i32_0 = arith.constant 0 : i32
    %c0_i32_1 = arith.constant 0 : i32
    return %arg0, %c0_i32, %c0_i32_0 : i32, i32, i32
  }
}

</mosaic_0001>

<bundles_post_ra>
// kernel: tpu_custom_call.1
= control target key start
LH: loop header
LB: loop body
LE: loop exit
PB: predicated region body
PF: predicated region fallthrough
CT: control target
= control target key end

     0   :  { %10 = vsyncpa [#allocation3], 0  ;;  %s2195_s0 = inlined_call_operand.hbm [shape: f32[2,16,32], index: 0, kind: input, shape index: {}]   ;;  %s2196_s1 = inlined_call_operand.hbm [shape: f32[32,96], index: 1, kind: input, shape index: {}]   ;;  %s2197_s2 = inlined_call_operand.vmem [shape: f32[1,96], index: 2, kind: input, shape index: {}]   ;;  %s2198_s3 = inlined_call_operand.hbm [shape: f32[32,32], index: 3, kind: input, shape index: {}]   ;;  %s2199_s4 = inlined_call_operand.vmem [shape: f32[1,32], index: 4, kind: input, shape index: {}]   ;;  %s2200_s5 = inlined_call_operand.hbm [shape: f32[2,16,32], index: 5, kind: output, shape index: {}]  }
   0x1   :  { %12 = vsyncpa [#allocation3 + $0x1], 0 }
   0x2   :  { %13 = vsyncpa [#allocation6], 0 }
   0x3   :  { %14 = vsyncpa [#allocation4], 0 }
   0x4   :  { %16 = vsyncpa [#allocation4 + $0x1], 0  ;;  %s1887_s18 = smov 0   ;;  %s1889_s19 = smov 0  }
   0x5   :  { %s1891_s20 = smov 0   ;;  %s1893_s21 = smov 0  }
   0x6 LB: > { %s1908_s22 = sadd.s32 4294967295, %s1834_s21   ;;  %s1398_s23 = sadd.s32 4294967294, %s1834_s21   ;;  %s1834_s21 = sphi %s1893_s21, %s2223_s21   ;;  %s1830_s20 = sphi %s1891_s20, %s2222_s20   ;;  %s1826_s19 = sphi %s1889_s19, %s2221_s19   ;;  %s1822_s18 = sphi %s1887_s18, %s2220_s18  }
   0x7   : > { %p42_p0 = scmp.ne.s32.totalorder %s1826_s19, %s1822_s18  ;;  %p2201_p1 = scmp.eq.s32.totalorder %s1908_s22, 0 }
   0x8   : > { %p150_p2 = scmp.eq.s32.totalorder %s1908_s22, 1  ;;  %p156_p3 = scmp.eq.s32.totalorder %s1398_s23, 1 }
   0x9   : > { %p1917_p4 = por %p2201_p1, %p42_p0  ;;  %p1399_p5 = scmp.ge.s32.totalorder %s1834_s21, 1 }
   0xa   : > { %p1922_p6 = por %p156_p3, %p42_p0  ;;  %p163_p7 = scmp.lt.s32.totalorder %s1834_s21, 3 }
   0xb   : > { %s2206_s24 = scalar_select %p1917_p4, 1, 0 }
   0xc   : > { %s2207_s25 = scalar_select %p1922_p6, 1, 0 }
   0xd   : > { %p1927_p8 = pnand %p1399_p5, %p163_p7  ;;  %s1836_s27 = smov [#allocation5]  }
   0xe   : > { %s175_s28 = sshll.u32 %s1836_s27, 4  ;;  %s1837_s30 = smov [#allocation7]   ;;  %s176_s28 = int_to_ptr.vmem [resolvable:$true] %s175_s28 }
   0xf   : > { %s2208_s26 = scalar_select %p1927_p8, 1, 0 }
  0x10   : > { %p1582_p9 = pneg %p1927_p8  ;;  %s191_s6 = sshll.u32 %s1837_s30, 4  ;;  %s192_s6 = int_to_ptr.vmem [resolvable:$true] %s191_s6 }
  0x11   : > { %s1697_s7 = scalar_lea.vmem %s176_s28, 512  ;;  %p1705_p5 = scmp.lt.s32.totalorder %s176_s28, %s176_s28 }
  0x12   : > { %p1936_p11 = pnand %p1582_p9, %p2201_p1  ;;  %p1698_p13 = scmp.ne.s32.totalorder %s176_s28, %s1697_s7 }
  0x13   : > { %p1706_p7 = scmp.lt.s32.totalorder %s1697_s7, %s1697_s7 }
  0x14   : > { %p1688_p12 = pneg %p1936_p11 }
  0x15   : > { %p1707_p10 = por %p1706_p7, %p1705_p5 }
  0x16   : > { %p1700_p0 = pnand %p1698_p13, %p1688_p12 }
  0x18   : > { %p1701_p3 = pneg %p1700_p0 }
  0x1a   : > { %p1708_p9 = pnand %p1707_p10, %p1701_p3 }
  0x1c   : > { %1711 = shalt.err (!%p1708_p9)
}
  0x1d   : > { %s2202_s8 = smov 128   ;;  %s1839_s9 = smov 8  }
  0x1e   : > { %1585 = dma.hbm_to_vmem [thread:$0]  (!%p1936_p11), %s2196_s1, 512, %s176_s28, [#allocation6], %s2202_s8, %s2202_s8, %s1839_s9  }
  0x1f   : > { %s1723_s12 = scalar_lea.vmem %s192_s6, 512  ;;  %p1731_p10 = scmp.lt.s32.totalorder %s192_s6, %s192_s6 }
  0x20   : > { %p1724_p13 = scmp.ne.s32.totalorder %s192_s6, %s1723_s12  ;;  %p1732_p3 = scmp.lt.s32.totalorder %s1723_s12, %s1723_s12 }
  0x22   : > { %p1726_p0 = pnand %p1724_p13, %p1688_p12  ;;  %p1733_p7 = por %p1732_p3, %p1731_p10 }
  0x24   : > { %p1727_p5 = pneg %p1726_p0 }
  0x26   : > { %p1734_p9 = pnand %p1733_p7, %p1727_p5 }
  0x28   : > { %1737 = shalt.err (!%p1734_p9)
}
  0x29   : > { %1588 = dma.hbm_to_vmem [thread:$0]  (!%p1936_p11), %s2198_s3, 512, %s192_s6, [#allocation6], %s2202_s8, %s2202_s8, %s1839_s9  }
  0x2a   : > { %s1965_s15 = sadd.s32 1, %s1834_s21   ;;  %s29_s16 = sadd.s32 1, %s1830_s20 }
  0x2b   : > { %s26_s17 = ssub.s32 %s1834_s21, %s1965_s15  ;;  %p36_p12 = scmp.ne.s32.totalorder %s1830_s20, %s1826_s19 }
  0x2c   : > { %p27_p13 = scmp.eq.s32.totalorder %s26_s17, 0  ;;  %p37_p0 = scmp.eq.s32.totalorder %s1834_s21, 0 }
  0x2d   : > { %p1975_p5 = por %p150_p2, %p36_p12  ;;  %p1599_p10 = scmp.lt.s32.totalorder %s1834_s21, 2 }
  0x2e   : > { %s1981_s27 = scalar_select %p27_p13, %s1830_s20, %s29_s16  }
  0x2f   : > { %s2210_s23 = scalar_select %p1975_p5, 1, 0 }
  0x30   : > { %p38_p3 = por %p37_p0, %p36_p12  ;;  %s208_s28 = sand.u32 1, %s1830_s20  }
  0x31   : > { %s1403_s29 = sshll.u32 %s208_s28, 4  ;;  %s1446_s30 = sshll.u32 %s1834_s21, 8 }
  0x32   : > { %s1988_s10 = scalar_lea.hbm %s2195_s0, %s1446_s30  ;;  %s212_s11 = scalar_lea.vmem [#allocation2], %s1403_s29 }
  0x33   : > { %s219_s12 = sshll.u32 %s212_s11, 4  ;;  %p1992_p2 = pnand %p1599_p10, %p38_p3  ;;  %s1990_s12 = int_to_ptr.vmem [resolvable:$true] %s219_s12 }
  0x34   : > { %s1996_s14 = scalar_lea.sflag [#allocation3], %s208_s28  ;;  %s1738_s16 = scalar_lea.hbm %s1988_s10, 256 }
  0x35   : > { %p1739_p11 = scmp.ne.s32.totalorder %s1988_s10, %s1738_s16  ;;  %p1740_p7 = pneg %p1992_p2 }
  0x36   : > { %s1743_s29 = scalar_lea.hbm %s2195_s0, 512  ;;  %p1744_p13 = scmp.lt.s32.totalorder %s1988_s10, %s2195_s0 }
  0x37   : > { %p1741_p9 = pnand %p1740_p7, %p1739_p11  ;;  %p1745_p0 = scmp.lt.s32.totalorder %s1743_s29, %s1738_s16 }
  0x39   : > { %p1742_p12 = pneg %p1741_p9  ;;  %p1746_p10 = por %p1745_p0, %p1744_p13 }
  0x3b   : > { %p1747_p3 = pnand %p1746_p10, %p1742_p12 }
  0x3d   : > { %1750 = shalt.err (!%p1747_p3)
}
  0x3e   : > { %s1751_s28 = scalar_lea.vmem %s1990_s12, 256  ;;  %s1840_s11 = smov [#allocation2]  }
  0x3f   : > { %p1752_p1 = scmp.ne.s32.totalorder %s1990_s12, %s1751_s28  ;;  %s1756_s8 = sshll.u32 %s1840_s11, 4  ;;  %s1757_s8 = int_to_ptr.vmem [resolvable:$false] %s1756_s8 }
  0x40   : > { %s1758_s17 = scalar_lea.vmem %s1757_s8, 512  ;;  %p1759_p9 = scmp.lt.s32.totalorder %s1990_s12, %s1757_s8 }
  0x41   : > { %p1754_p6 = pnand %p1752_p1, %p1740_p7  ;;  %p1760_p5 = scmp.lt.s32.totalorder %s1758_s17, %s1751_s28 }
  0x43   : > { %p1755_p11 = pneg %p1754_p6  ;;  %p1761_p4 = por %p1760_p5, %p1759_p9 }
  0x45   : > { %p1762_p8 = pnand %p1761_p4, %p1755_p11 }
  0x47   : > { %1765 = shalt.err (!%p1762_p8)
}
  0x48   : > { %s2212_s16 = smov 128   ;;  %p2213_p1 = scmp.ne.s32.totalorder %s2208_s26, 0 }
  0x49   : > { %1592 = dma.hbm_to_vmem [thread:$0]  (!%p1992_p2), %s1988_s10, 256, %s1990_s12, %s1996_s14, %s2212_s16, %s2212_s16, %s1839_s9  }
  0x4a   : > { %231 = sbr.rel (%p2213_p1) target bundleno = 2998 (0xbb6), region = 40  ;;  %s2023_s30 = sand.u32 (!%p2213_p1), 1, %s1826_s19  }
  0x4b   : > { %s1407_s8 = sshll.u32 (!%p2213_p1), %s2023_s30, 4  ;;  %s234_s29 = scalar_lea.sflag (!%p2213_p1), [#allocation3], %s2023_s30 }
  0x4c   : > { %s237_s13 = scalar_lea.vmem (!%p2213_p1), [#allocation2], %s1407_s8  ;;  %p2214_p4 = scmp.ne.s32.totalorder (!%p2213_p1), %s2206_s24, 0 }
  0x4f   : > { %1809 = dma.done.wait (%p2214_p4), %s234_s29, 256  }
  0x50   : > { %1811 = vsyncadd (%p2214_p4), %s234_s29, 4294967040  ;;  %p2215_p6 = scmp.eq.s32.totalorder %s1908_s22, 0 }
  0x52   : > { %1813 = dma.done.wait (%p2215_p6), [#allocation6], 1024   ;;  %p2216_p8 = pmov %p2215_p6 }
  0x53   : > { %vm285_vm0 = vcmask 261120   ;;  %v277_v0 = vld [vmem:[#allocation5 + $0x18] sm:$0xff]  ;;  %v276_v1 = vld [vmem:[#allocation5 + $0x10] sm:$0xff]  ;;  %v275_v3 = vld [vmem:[#allocation5 + $0x8] sm:$0xff]  ;;  %vm373_vm1 = vcmask 64512   ;;  %s1841_s9 = smov 96  }
  0x54   : > { %1815 = vsyncadd (%p2216_p8), [#allocation6], 4294966272  ;;  %1492 = vmatprep.subr.mxu0 %v277_v0  ;;  %v272_v2 = vld [vmem:[%s237_s13] sm:$0xff]  ;;  %v273_v5 = vld [vmem:[%s237_s13 + $0x8] sm:$0xff]  ;;  %vm457_vm2 = vcmask 130048   ;;  %s1842_s10 = smov 64  }
  0x55   : > { %1493 = vmatpush3.msra.mxu0 %v277_v0  ;;  %1500 = vmatprep.mubr.msk.f32.mxu0 %vm285_vm0, %v272_v2  ;;  %v274_v4 = vld [vmem:[#allocation5] sm:$0xff]  ;;  %s1843_s12 = smov 120   ;;  %s1844_s14 = smov 88   ;;  %vm1195_vm3 = vcmask 195584  }
  0x56   : > { %1494 = vmatprep.subr.mxu0 %v276_v1  ;;  %v1411_v6 = vld [vmem:[%s2197_s2] ss:$0 sm:$0xff]  ;;  %s1845_s6 = smov 56   ;;  %s1846_s7 = smov 80  }
  0x57   : > { %1495 = vmatpush3.msra.mxu0 %v276_v1  ;;  %s1847_s28 = smov 112   ;;  %s1848_s11 = smov 48  }
  0x58   : > { %1496 = vmatprep.subr.mxu0 %v275_v3  ;;  %s1849_s17 = smov 72   ;;  %s1850_s16 = smov 104  }
  0x59   : > { %1497 = vmatpush3.msra.mxu0 %v275_v3  ;;  %s1851_s29 = smov 40   ;;  %s1852_s13 = smov 8  }
  0x5a   : > { %1498 = vmatprep.subr.mxu0 %v274_v4  ;;  %s1853_s24 = smov 16   ;;  %s1854_s26 = smov 24  }
  0x5b   : > { %1499 = vmatpush3.msra.mxu0 %v274_v4  ;;  %p2217_p2 = scmp.ne.s32.totalorder %s2210_s23, 0 }
  0x5c   : > { %1501 = vmatmul.mubr.msk.f32.vlgmr.msra.gmra.mxu0 %vm285_vm0, %v273_v5 }
 0x11c   : > { %v1502_v7 = vpop.f32.mrf.mxu0 }
 0x11d   : > { %v2042_v8 = vadd.f32 %v1502_v7, %v1411_v6 }
 0x11e   : > { %v358_v9 = vpop.f32.mrf.mxu0 }
 0x11f   : > { %v2044_v10 = vadd.f32 %v1411_v6, %v358_v9  ;;  %371 = vrot.lane.b32.xlu0 %v2042_v8, %s1841_s9 }
 0x121   : > { %1507 = vmatprep.mubr.msk.f32.mxu1 %vm373_vm1, %v2044_v10 }
 0x123   : > { %369 = vrot.lane.b32.xlu0 %v2044_v10, %s1841_s9 }
 0x191   : > { %v372_v11 = vpop.permute.xlu0 %371 }
 0x192   : > { %1503 = vmatprep.subr.msk.mxu1 %vm373_vm1, %v372_v11 }
 0x193   : > { %1504 = vmatpush3.xpose.msk.msra.mxu1 %vm373_vm1, %v372_v11 }
 0x195   : > { %v370_v12 = vpop.permute.xlu0 %369 }
 0x196   : > { %1505 = vmatprep.subr.msk.mxu1 %vm373_vm1, %v370_v12 }
 0x197   : > { %1506 = vmatpush3.xpose.msk.msra.mxu1 %vm373_vm1, %v370_v12 }
 0x19a   : > { %1508 = vmatmul.mubr.msk.f32.vlgmr.msra.gmra.mxu1 %vm373_vm1, %v2042_v8 }
 0x25a   : > { %v1509_v13 = vpop.f32.mrf.mxu1 }
 0x25b   : > { %v461_v16 = vsel %vm457_vm2, %v1509_v13, -inf }
 0x25c   : > { %v448_v14 = vpop.f32.mrf.mxu1 }
 0x25d   : > { %v458_v15 = vsel %vm457_vm2, %v448_v14, -inf }
 0x25e   : > { %459 = vmax.xlane.f32.xlu1 %v458_v15 }
 0x262   : > { %462 = vmax.xlane.f32.xlu1 %v461_v16 }
 0x2e7   : > { %v460_v17 = vpop.xlane.xlu1 %459 }
 0x2e8   : > { %v464_v18 = vsub.f32 %v448_v14, %v460_v17 }
 0x2ea   : > { %v466_v19 = vmul.f32 1.442695, %v464_v18 }
 0x2eb   : > { %v463_v20 = vpop.xlane.xlu1 %462 }
 0x2ec   : > { %1654 = vpow2.f32 %v466_v19  ;;  %v465_v21 = vsub.f32 %v1509_v13, %v463_v20 }
 0x2ee   : > { %v468_v22 = vmul.f32 1.442695, %v465_v21 }
 0x2f0   : > { %1656 = vpow2.f32 %v468_v22 }
 0x2f9   : > { %v1655_v23 = vpop.eup %1654 }
 0x2fa   : > { %v470_v24 = vsel %vm457_vm2, %v1655_v23, 0.0 }
 0x2fb   : > { %471 = vadd.xlane.f32.xlu0 %v470_v24 }
 0x2fd   : > { %v1657_v25 = vpop.eup %1656 }
 0x2fe   : > { %v473_v26 = vsel %vm457_vm2, %v1657_v25, 0.0 }
 0x2ff   : > { %474 = vadd.xlane.f32.xlu1 %v473_v26 }
 0x310   : > { %482 = vrot.lane.b32.xlu1 %v2042_v8, %s1842_s10 }
 0x311   : > { %567 = vrot.lane.b32.xlu0 %v2044_v10, %s1843_s12 }
 0x314   : > { %480 = vrot.lane.b32.xlu1 %v2044_v10, %s1842_s10 }
 0x318   : > { %573 = vrot.lane.b32.xlu1 %v2042_v8, %s1844_s14 }
 0x31c   : > { %571 = vrot.lane.b32.xlu1 %v2044_v10, %s1844_s14 }
 0x320   : > { %569 = vrot.lane.b32.xlu1 %v2042_v8, %s1843_s12  ;;  %s271_s12 = scalar_lea.vmem [#allocation8], %s1407_s8  ;;  %s1293_s8 = scalar_lea.sflag [#allocation4], %s2023_s30 }
 0x321   : > { %s1306_s14 = sshll.u32 %s271_s12, 4  ;;  %s2144_s14 = int_to_ptr.vmem [resolvable:$true] %s1306_s14 }
 0x384   : > { %v472_v27 = vpop.xlane.xlu0 %471 }
 0x385   : > { %1658 = vrcp.f32 %v472_v27 }
 0x388   : > { %v475_v28 = vpop.xlane.xlu1 %474  ;;  %v568_v37 = vpop.permute.xlu0 %567 }
 0x389   : > { %1660 = vrcp.f32 %v475_v28 }
 0x38c   : > { %v483_v29 = vpop.permute.xlu1 %482 }
 0x38d   : > { %1510 = vmatprep.subr.mxu1 %v483_v29 }
 0x38e   : > { %1511 = vmatpush3.msra.mxu1 %v483_v29 }
 0x390   : > { %v481_v30 = vpop.permute.xlu1 %480 }
 0x391   : > { %1512 = vmatprep.subr.mxu1 %v481_v30 }
 0x392   : > { %v1659_v31 = vpop.eup %1658  ;;  %1513 = vmatpush3.msra.mxu1 %v481_v30 }
 0x393   : > { %v477_v32 = vmul.f32 %v1659_v31, %v1655_v23 }
 0x394   : > { %v574_v33 = vpop.permute.xlu1 %573 }
 0x395   : > { %1514 = vmatprep.mubr.msk.f32.mxu1 %vm457_vm2, %v477_v32  ;;  %1517 = vmatprep.subr.msk.mxu1 %vm373_vm1, %v574_v33 }
 0x396   : > { %v1661_v34 = vpop.eup %1660 }
 0x397   : > { %v479_v35 = vmul.f32 %v1661_v34, %v1657_v25 }
 0x398   : > { %v572_v36 = vpop.permute.xlu1 %571 }
 0x399   : > { %1515 = vmatmul.mubr.msk.f32.vlgmr.msra.gmra.mxu1 %vm457_vm2, %v479_v35 }
 0x39a   : > { %1518 = vmatpush3.xpose.msk.msra.mxu1 %vm373_vm1, %v574_v33  ;;  %1521 = vmatprep.mubr.msk.f32.mxu1 %vm373_vm1, %v568_v37 }
 0x39b   : > { %1519 = vmatprep.subr.msk.mxu1 %vm373_vm1, %v572_v36 }
 0x39c   : > { %v570_v38 = vpop.permute.xlu1 %569 }
 0x39e   : > { %1520 = vmatpush3.xpose.msk.msra.mxu1 %vm373_vm1, %v572_v36 }
 0x3a1   : > { %1522 = vmatmul.mubr.msk.f32.vlgmr.msra.gmra.mxu1 %vm373_vm1, %v570_v38 }
 0x459   : > { %v2074_v39 = vpop.f32.mrf.mxu1 }
 0x45b   : > { %v2076_v40 = vpop.f32.mrf.mxu1 }
 0x461   : > { %v1523_v41 = vpop.f32.mrf.mxu1 }
 0x462   : > { %v661_v42 = vsel %vm457_vm2, %v1523_v41, -inf }
 0x463   : > { %662 = vmax.xlane.f32.xlu0 %v661_v42  ;;  %v649_v43 = vpop.f32.mrf.mxu1 }
 0x464   : > { %v658_v44 = vsel %vm457_vm2, %v649_v43, -inf }
 0x465   : > { %659 = vmax.xlane.f32.xlu1 %v658_v44 }
 0x476   : > { %682 = vrot.lane.b32.xlu1 %v2042_v8, %s1845_s6 }
 0x479   : > { %680 = vrot.lane.b32.xlu0 %v2044_v10, %s1845_s6  ;;  %s1447_s6 = sshll.u32 %s1908_s22, 8  ;;  %s1855_s22 = smov [#allocation8]  }
 0x47a   : > { %773 = vrot.lane.b32.xlu1 %v2042_v8, %s1846_s7 }
 0x47d   : > { %767 = vrot.lane.b32.xlu0 %v2044_v10, %s1847_s28 }
 0x47e   : > { %771 = vrot.lane.b32.xlu1 %v2044_v10, %s1846_s7 }
 0x4ec   : > { %v663_v45 = vpop.xlane.xlu0 %662 }
 0x4ed   : > { %v665_v46 = vsub.f32 %v1523_v41, %v663_v45 }
 0x4ee   : > { %v660_v47 = vpop.xlane.xlu1 %659 }
 0x4ef   : > { %v668_v48 = vmul.f32 1.442695, %v665_v46  ;;  %v664_v49 = vsub.f32 %v649_v43, %v660_v47 }
 0x4f0   : > { %v681_v52 = vpop.permute.xlu0 %680 }
 0x4f1   : > { %1662 = vpow2.f32 %v668_v48  ;;  %v666_v50 = vmul.f32 1.442695, %v664_v49 }
 0x4f2   : > { %v683_v51 = vpop.permute.xlu1 %682 }
 0x4f3   : > { %1664 = vpow2.f32 %v666_v50  ;;  %1524 = vmatprep.subr.mxu0 %v683_v51 }
 0x4f4   : > { %1525 = vmatpush3.msra.mxu0 %v683_v51  ;;  %v768_v1 = vpop.permute.xlu0 %767 }
 0x4f5   : > { %1526 = vmatprep.subr.mxu0 %v681_v52 }
 0x4f6   : > { %1527 = vmatpush3.msra.mxu0 %v681_v52  ;;  %v774_v53 = vpop.permute.xlu1 %773 }
 0x4f7   : > { %1531 = vmatprep.subr.msk.mxu0 %vm373_vm1, %v774_v53 }
 0x4fa   : > { %v772_v58 = vpop.permute.xlu1 %771 }
 0x4fe   : > { %v1663_v54 = vpop.eup %1662 }
 0x4ff   : > { %v673_v55 = vsel %vm457_vm2, %v1663_v54, 0.0 }
 0x500   : > { %v1665_v56 = vpop.eup %1664  ;;  %674 = vadd.xlane.f32.xlu1 %v673_v55 }
 0x501   : > { %v670_v57 = vsel %vm457_vm2, %v1665_v56, 0.0 }
 0x504   : > { %671 = vadd.xlane.f32.xlu1 %v670_v57 }
 0x515   : > { %769 = vrot.lane.b32.xlu1 %v2042_v8, %s1847_s28 }
 0x589   : > { %v675_v59 = vpop.xlane.xlu1 %674 }
 0x58a   : > { %1666 = vrcp.f32 %v675_v59  ;;  %v1200_v59 = vld [vmem:[#allocation7 + $0x10] sm:$0xff] }
 0x58d   : > { %v672_v60 = vpop.xlane.xlu1 %671 }
 0x58e   : > { %1668 = vrcp.f32 %v672_v60  ;;  %v1198_v60 = vld [vmem:[#allocation7] sm:$0xff] }
 0x591   : > { %v770_v2 = vpop.permute.xlu1 %769 }
 0x597   : > { %v1667_v61 = vpop.eup %1666 }
 0x598   : > { %v679_v0 = vmul.f32 %v1667_v61, %v1663_v54 }
 0x59b   : > { %v1669_v62 = vpop.eup %1668 }
 0x59c   : > { %v677_v63 = vmul.f32 %v1669_v62, %v1665_v56 }
 0x59e   : > { %1528 = vmatprep.mubr.msk.f32.mxu0 %vm457_vm2, %v677_v63 }
 0x59f   : > { %1529 = vmatmul.mubr.msk.f32.vlgmr.msra.gmra.mxu0 %vm457_vm2, %v679_v0 }
 0x5a0   : > { %1532 = vmatpush3.xpose.msk.msra.mxu0 %vm373_vm1, %v774_v53  ;;  %1535 = vmatprep.mubr.msk.f32.mxu0 %vm373_vm1, %v768_v1 }
 0x5a1   : > { %1533 = vmatprep.subr.msk.mxu0 %vm373_vm1, %v772_v58 }
 0x5a4   : > { %1534 = vmatpush3.xpose.msk.msra.mxu0 %vm373_vm1, %v772_v58  ;;  %v1201_v58 = vld [vmem:[#allocation7 + $0x18] sm:$0xff] }
 0x5a7   : > { %1536 = vmatmul.mubr.msk.f32.vlgmr.msra.gmra.mxu0 %vm373_vm1, %v770_v2 }
 0x65f   : > { %v2096_v3 = vpop.f32.mrf.mxu0 }
 0x661   : > { %v2098_v4 = vpop.f32.mrf.mxu0 }
 0x667   : > { %v1537_v5 = vpop.f32.mrf.mxu0 }
 0x668   : > { %v861_v6 = vsel %vm457_vm2, %v1537_v5, -inf }
 0x669   : > { %862 = vmax.xlane.f32.xlu1 %v861_v6  ;;  %v849_v7 = vpop.f32.mrf.mxu0 }
 0x66a   : > { %v858_v9 = vsel %vm457_vm2, %v849_v7, -inf }
 0x66b   : > { %859 = vmax.xlane.f32.xlu0 %v858_v9 }
 0x67a   : > { %882 = vrot.lane.b32.xlu1 %v2042_v8, %s1848_s11 }
 0x67e   : > { %973 = vrot.lane.b32.xlu1 %v2042_v8, %s1849_s17 }
 0x682   : > { %971 = vrot.lane.b32.xlu1 %v2044_v10, %s1849_s17  ;;  %s1766_s17 = scalar_lea.vmem %s2144_s14, 256 }
 0x683   : > { %p1767_p5 = scmp.ne.s32.totalorder %s2144_s14, %s1766_s17 }
 0x685   : > { %p1768_p7 = pnand %p1767_p5, %p2217_p2 }
 0x686   : > { %969 = vrot.lane.b32.xlu1 %v2042_v8, %s1850_s16 }
 0x687   : > { %p1769_p12 = pneg %p1768_p7 }
 0x6f2   : > { %v863_v11 = vpop.xlane.xlu1 %862 }
 0x6f3   : > { %v865_v12 = vsub.f32 %v1537_v5, %v863_v11 }
 0x6f4   : > { %v860_v13 = vpop.xlane.xlu0 %859 }
 0x6f5   : > { %v868_v14 = vmul.f32 1.442695, %v865_v12  ;;  %v864_v15 = vsub.f32 %v849_v7, %v860_v13 }
 0x6f6   : > { %v883_v16 = vpop.permute.xlu1 %882 }
 0x6f7   : > { %1670 = vpow2.f32 %v868_v14  ;;  %v866_v17 = vmul.f32 1.442695, %v864_v15  ;;  %1538 = vmatprep.subr.mxu1 %v883_v16 }
 0x6f8   : > { %1539 = vmatpush3.msra.mxu1 %v883_v16 }
 0x6f9   : > { %1672 = vpow2.f32 %v866_v17 }
 0x6fa   : > { %v974_v25 = vpop.permute.xlu1 %973 }
 0x6fe   : > { %v972_v31 = vpop.permute.xlu1 %971 }
 0x702   : > { %v970_v32 = vpop.permute.xlu1 %969 }
 0x704   : > { %v1671_v18 = vpop.eup %1670 }
 0x705   : > { %v873_v19 = vsel %vm457_vm2, %v1671_v18, 0.0 }
 0x706   : > { %v1673_v20 = vpop.eup %1672  ;;  %874 = vadd.xlane.f32.xlu0 %v873_v19 }
 0x707   : > { %v870_v21 = vsel %vm457_vm2, %v1673_v20, 0.0 }
 0x70a   : > { %871 = vadd.xlane.f32.xlu0 %v870_v21 }
 0x720   : > { %880 = vrot.lane.b32.xlu0 %v2044_v10, %s1848_s11  ;;  %s2150_s11 = scalar_lea.hbm %s2200_s5, %s1447_s6 }
 0x724   : > { %967 = vrot.lane.b32.xlu0 %v2044_v10, %s1850_s16  ;;  %s1770_s16 = sshll.u32 %s1855_s22, 4  ;;  %s1771_s16 = int_to_ptr.vmem [resolvable:$false] %s1770_s16 }
 0x725   : > { %p1773_p13 = scmp.lt.s32.totalorder %s2144_s14, %s1771_s16 }
 0x78f   : > { %v875_v22 = vpop.xlane.xlu0 %874 }
 0x790   : > { %1674 = vrcp.f32 %v875_v22 }
 0x793   : > { %v872_v23 = vpop.xlane.xlu0 %871 }
 0x794   : > { %1676 = vrcp.f32 %v872_v23 }
 0x797   : > { %v881_v24 = vpop.permute.xlu0 %880 }
 0x798   : > { %1540 = vmatprep.subr.mxu1 %v881_v24 }
 0x799   : > { %1541 = vmatpush3.msra.mxu1 %v881_v24 }
 0x79a   : > { %1545 = vmatprep.subr.msk.mxu1 %vm373_vm1, %v974_v25 }
 0x79b   : > { %v968_v30 = vpop.permute.xlu0 %967 }
 0x79d   : > { %v1675_v26 = vpop.eup %1674 }
 0x79e   : > { %v879_v29 = vmul.f32 %v1675_v26, %v1671_v18 }
 0x7a1   : > { %v1677_v27 = vpop.eup %1676 }
 0x7a2   : > { %v877_v28 = vmul.f32 %v1677_v27, %v1673_v20 }
 0x7a4   : > { %1542 = vmatprep.mubr.msk.f32.mxu1 %vm457_vm2, %v877_v28 }
 0x7a5   : > { %1543 = vmatmul.mubr.msk.f32.vlgmr.msra.gmra.mxu1 %vm457_vm2, %v879_v29 }
 0x7a6   : > { %1546 = vmatpush3.xpose.msk.msra.mxu1 %vm373_vm1, %v974_v25  ;;  %1549 = vmatprep.mubr.msk.f32.mxu1 %vm373_vm1, %v968_v30 }
 0x7a7   : > { %1547 = vmatprep.subr.msk.mxu1 %vm373_vm1, %v972_v31 }
 0x7aa   : > { %1548 = vmatpush3.xpose.msk.msra.mxu1 %vm373_vm1, %v972_v31 }
 0x7ad   : > { %1550 = vmatmul.mubr.msk.f32.vlgmr.msra.gmra.mxu1 %vm373_vm1, %v970_v32 }
 0x865   : > { %v1544_v33 = vpop.f32.mrf.mxu1 }
 0x867   : > { %v958_v34 = vpop.f32.mrf.mxu1 }
 0x86d   : > { %v1551_v35 = vpop.f32.mrf.mxu1 }
 0x86e   : > { %v1061_v36 = vsel %vm457_vm2, %v1551_v35, -inf }
 0x86f   : > { %1062 = vmax.xlane.f32.xlu1 %v1061_v36  ;;  %v1049_v37 = vpop.f32.mrf.mxu1 }
 0x870   : > { %v1058_v38 = vsel %vm457_vm2, %v1049_v37, -inf }
 0x871   : > { %1059 = vmax.xlane.f32.xlu0 %v1058_v38 }
 0x880   : > { %1082 = vrot.lane.b32.xlu1 %v2042_v8, %s1851_s29 }
 0x884   : > { %1169 = vrot.lane.b32.xlu1 %v2098_v4, %s1852_s13 }
 0x888   : > { %1171 = vrot.lane.b32.xlu1 %v2096_v3, %s1852_s13 }
 0x88c   : > { %1179 = vrot.lane.b32.xlu1 %v1544_v33, %s1853_s24 }
 0x8f8   : > { %v1063_v41 = vpop.xlane.xlu1 %1062 }
 0x8f9   : > { %v1065_v42 = vsub.f32 %v1551_v35, %v1063_v41 }
 0x8fa   : > { %v1060_v43 = vpop.xlane.xlu0 %1059 }
 0x8fb   : > { %v1068_v44 = vmul.f32 1.442695, %v1065_v42  ;;  %v1064_v45 = vsub.f32 %v1049_v37, %v1060_v43 }
 0x8fc   : > { %v1083_v46 = vpop.permute.xlu1 %1082 }
 0x8fd   : > { %1678 = vpow2.f32 %v1068_v44  ;;  %v1066_v47 = vmul.f32 1.442695, %v1064_v45  ;;  %1552 = vmatprep.subr.mxu0 %v1083_v46 }
 0x8fe   : > { %1553 = vmatpush3.msra.mxu0 %v1083_v46 }
 0x8ff   : > { %1680 = vpow2.f32 %v1066_v47 }
 0x900   : > { %v1170_v63 = vpop.permute.xlu1 %1169 }
 0x901   : > { %v1191_v3 = vsel %vm373_vm1, %v2076_v40, %v1170_v63  ;;  %v1438_v40 = vld [vmem:[%s2199_s4] ss:$0 sm:$0xff] }
 0x904   : > { %v1172_v0 = vpop.permute.xlu1 %1171 }
 0x905   : > { %v1192_v5 = vsel %vm373_vm1, %v2074_v39, %v1172_v0 }
 0x908   : > { %v1180_v1 = vpop.permute.xlu1 %1179 }
 0x909   : > { %v1194_v9 = vsel %vm457_vm2, %v1192_v5, %v1180_v1 }
 0x90a   : > { %v1679_v8 = vpop.eup %1678 }
 0x90b   : > { %v1073_v48 = vsel %vm457_vm2, %v1679_v8, 0.0 }
 0x90c   : > { %v1681_v49 = vpop.eup %1680  ;;  %1074 = vadd.xlane.f32.xlu0 %v1073_v48 }
 0x90d   : > { %v1070_v50 = vsel %vm457_vm2, %v1681_v49, 0.0 }
 0x910   : > { %1071 = vadd.xlane.f32.xlu0 %v1070_v50 }
 0x926   : > { %1080 = vrot.lane.b32.xlu0 %v2044_v10, %s1851_s29  ;;  %v1199_v10 = vld [vmem:[#allocation7 + $0x8] sm:$0xff]  ;;  %s1772_s29 = scalar_lea.vmem %s1771_s16, 512 }
 0x927   : > { %p1774_p0 = scmp.lt.s32.totalorder %s1772_s29, %s1766_s17 }
 0x929   : > { %p1775_p10 = por %p1774_p0, %p1773_p13 }
 0x92a   : > { %1177 = vrot.lane.b32.xlu0 %v958_v34, %s1853_s24 }
 0x92b   : > { %p1776_p3 = pnand %p1775_p10, %p1769_p12 }
 0x995   : > { %v1075_v51 = vpop.xlane.xlu0 %1074 }
 0x996   : > { %1682 = vrcp.f32 %v1075_v51 }
 0x999   : > { %v1072_v52 = vpop.xlane.xlu0 %1071 }
 0x99a   : > { %1684 = vrcp.f32 %v1072_v52 }
 0x99d   : > { %v1081_v53 = vpop.permute.xlu0 %1080 }
 0x99e   : > { %1554 = vmatprep.subr.mxu0 %v1081_v53 }
 0x99f   : > { %1555 = vmatpush3.msra.mxu0 %v1081_v53 }
 0x9a0   : > { %1559 = vmatprep.subr.mxu0 %v1201_v58 }
 0x9a1   : > { %v1178_v2 = vpop.permute.xlu0 %1177 }
 0x9a2   : > { %v1193_v6 = vsel %vm457_vm2, %v1191_v3, %v1178_v2 }
 0x9a3   : > { %v1683_v54 = vpop.eup %1682 }
 0x9a4   : > { %v1079_v57 = vmul.f32 %v1683_v54, %v1679_v8 }
 0x9a7   : > { %v1685_v55 = vpop.eup %1684 }
 0x9a8   : > { %v1077_v56 = vmul.f32 %v1685_v55, %v1681_v49 }
 0x9aa   : > { %1556 = vmatprep.mubr.msk.f32.mxu0 %vm457_vm2, %v1077_v56 }
 0x9ab   : > { %1557 = vmatmul.mubr.msk.f32.vlgmr.msra.gmra.mxu0 %vm457_vm2, %v1079_v57 }
 0x9ac   : > { %1560 = vmatpush3.msra.mxu0 %v1201_v58 }
 0x9ad   : > { %1561 = vmatprep.subr.mxu0 %v1200_v59 }
 0x9ae   : > { %1562 = vmatpush3.msra.mxu0 %v1200_v59 }
 0x9af   : > { %1563 = vmatprep.subr.mxu0 %v1199_v10 }
 0x9b0   : > { %1564 = vmatpush3.msra.mxu0 %v1199_v10 }
 0x9b1   : > { %1565 = vmatprep.subr.mxu0 %v1198_v60 }
 0x9b2   : > { %1566 = vmatpush3.msra.mxu0 %v1198_v60 }
 0xa6b   : > { %v1558_v61 = vpop.f32.mrf.mxu0 }
 0xa6c   : > { %1187 = vrot.lane.b32.xlu1 %v1558_v61, %s1854_s26 }
 0xa6d   : > { %v1158_v62 = vpop.f32.mrf.mxu0 }
 0xa6e   : > { %1185 = vrot.lane.b32.xlu0 %v1158_v62, %s1854_s26 }
 0xade   : > { %v1188_v4 = vpop.permute.xlu1 %1187 }
 0xadf   : > { %v1197_v12 = vsel %vm1195_vm3, %v1194_v9, %v1188_v4 }
 0xae0   : > { %v1186_v7 = vpop.permute.xlu0 %1185 }
 0xae1   : > { %v1196_v11 = vsel %vm1195_vm3, %v1193_v6, %v1186_v7 }
 0xae2   : > { %1567 = vmatprep.mubr.msk.f32.mxu0 %vm285_vm0, %v1196_v11 }
 0xae3   : > { %1568 = vmatmul.mubr.msk.f32.vlgmr.msra.gmra.mxu0 %vm285_vm0, %v1197_v12 }
 0xba3   : > { %v1569_v39 = vpop.f32.mrf.mxu0 }
 0xba4   : > { %v1287_v13 = vadd.f32 %v1569_v39, %v1438_v40 }
 0xba5   : > { %v1281_v14 = vpop.f32.mrf.mxu0 }
 0xba6   : > { %1291 = vst.msk [vmem:[%s271_s12 + $0x8] sm:$0xff] %vm285_vm0, %v1287_v13  ;;  %v1282_v15 = vadd.f32 %v1438_v40, %v1281_v14 }
 0xba8   : > { %1290 = vst.msk [vmem:[%s271_s12] sm:$0xff] %vm285_vm0, %v1282_v15 }
 0xba9   : > { %1779 = shalt.err (!%p1776_p3)
}
 0xbaa   : > { %s1780_s24 = scalar_lea.hbm %s2150_s11, 256  ;;  %s1784_s10 = scalar_lea.hbm %s2200_s5, 512 }
 0xbab   : > { %p1781_p11 = scmp.ne.s32.totalorder %s2150_s11, %s1780_s24  ;;  %p1785_p4 = scmp.lt.s32.totalorder %s2150_s11, %s2200_s5 }
 0xbac   : > { %p1786_p6 = scmp.lt.s32.totalorder %s1784_s10, %s1780_s24 }
 0xbad   : > { %p1782_p9 = pnand %p1781_p11, %p2217_p2 }
 0xbae   : > { %p1787_p8 = por %p1786_p6, %p1785_p4 }
 0xbaf   : > { %p1783_p1 = pneg %p1782_p9 }
 0xbb1   : > { %p1788_p5 = pnand %p1787_p8, %p1783_p1 }
 0xbb3   : > { %1791 = shalt.err (!%p1788_p5)
}
 0xbb4   : > { %s1856_s7 = smov 128  }
 0xbb5   : > { %1580 = dma.vmem_to_hbm [thread:$0]  (%p2217_p2), %s2144_s14, 256, %s2150_s11, %s1293_s8, %s1856_s7, %s1856_s7, %s1852_s13  }
 0xbb6 PF: > { %s1321_s28 = sand.u32 1, %s1822_s18   ;;  %p2218_p7 = scmp.ne.s32.totalorder %s2207_s25, 0 }
 0xbb7   : > { %p2219_p12 = scmp.ge.s32.totalorder %s1834_s21, 2  ;;  %s1322_s17 = scalar_lea.sflag [#allocation4], %s1321_s28 }
 0xbb9   : > { %p1594_p13 = pnand %p2219_p12, %p2218_p7 }
 0xbbb   : > { %p1595_p0 = pneg %p1594_p13 }
 0xbbd   : > { %1817 = dma.done.wait (%p1595_p0), %s1322_s17, 256  }
 0xbbe   : > { %1819 = vsyncadd (%p1595_p0), %s1322_s17, 4294967040  ;;  %p19_p10 = scmp.ge.s32.totalorder %s1965_s15, 4   ;;  %s2220_s18 = smov %s1826_s19 }
 0xbbf   : > { %s2221_s19 = smov %s1830_s20  ;;  %s2222_s20 = smov %s1981_s27 }
 0xbc0   : > { %s2223_s21 = smov %s1965_s15  ;;  %21 = sbr.rel (!%p19_p10) target bundleno = 6 (0x6), region = 93 }
 0xbc5   :  { %1327 = vsyncpa [#allocation3], 1 }
 0xbc6   :  { %1329 = vsyncpa [#allocation3 + $0x1], 1 }
 0xbc7   :  { %1330 = vsyncpa [#allocation6], 1 }
 0xbc8   :  { %1331 = vsyncpa [#allocation4], 1 }
 0xbc9   :  { %1333 = vsyncpa [#allocation4 + $0x1], 1 }

</bundles_post_ra>
